<compile_context>
chip_gen: v7x
topology: tpu7x:2x2x1
jax: 0.10.0
libtpu: 0.0.40
codegen_flags: <defaults>
</compile_context>

<pallas_src>
import jax
import jax.numpy as jnp
from jax.experimental import pallas as pl
from jax.experimental.pallas import tpu as pltpu

EPSILON_FP16 = 1e-05


# ----------------------------------------------------------------------------
# Kernels
# ----------------------------------------------------------------------------
def _classifier_relu_kernel(x_ref, w1_ref, b1_ref, w2_ref, b2_ref,
                            w3_ref, b3_ref, o_ref):
    # TODO(synk): Dropout layers are inference-mode identity; not emitted.
    x = x_ref[...]                      # native dtype -> fast MXU path
    dt = x.dtype

    h1 = jnp.dot(x, w1_ref[...], preferred_element_type=jnp.float32)
    h1 = jnp.maximum(h1 + b1_ref[...].astype(jnp.float32), 0.0)
    h1 = h1.astype(dt)                  # keep next matmul on fast MXU path

    h2 = jnp.dot(h1, w2_ref[...], preferred_element_type=jnp.float32)
    h2 = jnp.maximum(h2 + b2_ref[...].astype(jnp.float32), 0.0)
    h2 = h2.astype(dt)

    out = jnp.dot(h2, w3_ref[...], preferred_element_type=jnp.float32)
    out = out + b3_ref[...].astype(jnp.float32)
    o_ref[...] = out.astype(o_ref.dtype)


def _classifier_swish_kernel(x_ref, w1_ref, b1_ref, w2_ref, b2_ref, o_ref):
    # TODO(synk): Dropout layers are inference-mode identity; not emitted.
    x = x_ref[...]
    dt = x.dtype

    h = jnp.dot(x, w1_ref[...], preferred_element_type=jnp.float32)
    h = h + b1_ref[...].astype(jnp.float32)
    # Swish with the module's clamped sigmoid gate (sigmoid runs on the EUP).
    gate = jnp.clip(jax.nn.sigmoid(h), EPSILON_FP16, 1.0 - EPSILON_FP16)
    h = (h * gate).astype(dt)

    out = jnp.dot(h, w2_ref[...], preferred_element_type=jnp.float32)
    out = out + b2_ref[...].astype(jnp.float32)
    o_ref[...] = out.astype(o_ref.dtype)


# ----------------------------------------------------------------------------
# Tiling / wrapper helpers
# ----------------------------------------------------------------------------
def _round_up(x: int, m: int) -> int:
    return ((x + m - 1) // m) * m


def _batch_tiling(b: int):
    """Return (padded_batch, batch_tile).

    * tile is a multiple of 8 (sublane), capped at 1024 rows,
    * padded_batch is a multiple of tile (ragged batches padded, never TB=8
      fallback for large B),
    * grid has >= 2 steps whenever B > 8 so the "parallel" axis can shard
      across both v7x TensorCores (no effect on single-TC v5e/v6e).
    """
    if b <= 8:
        return 8, 8
    cap = 1024
    tb = min(cap, _round_up(pl.cdiv(b, 2), 8))
    b_pad = _round_up(b, tb)
    return b_pad, tb


def _derive_vmem_limit(tile_io_bytes: int, weight_bytes: int,
                       interm_bytes: int) -> int:
    """Scoped-VMEM limit from actual slab sizes, capped for v7x's 64 MiB VMEM."""
    need = 2 * (tile_io_bytes + weight_bytes) + interm_bytes + (4 << 20)
    return int(min(max(need, 8 << 20), 48 << 20))


def _weight_spec(shape):
    # Full weight resident in VMEM across all grid steps (constant block index).
    # TODO(synk): pipeline_mode=pl.Buffered(1) would single-buffer these; only
    # worth it if hidden_dims grows enough to matter against v7x's 64 MiB VMEM.
    return pl.BlockSpec(shape, lambda i: (0, 0))


# ----------------------------------------------------------------------------
# Wrappers
# ----------------------------------------------------------------------------
def classifier_relu(x, w1, b1, w2, b2, w3, b3):
    """'relu' Clasifier: x:(B,E), w1:(E,H), w2:(H,H), w3:(H,C); biases (1,.)."""
    b, e = x.shape
    h = w1.shape[1]
    c = w3.shape[1]

    b_pad, tb = _batch_tiling(b)
    c_pad = _round_up(c, 128)           # lane-dense output stores

    xp = x if b_pad == b else jnp.pad(x, ((0, b_pad - b), (0, 0)))
    w3p, b3p = w3, b3
    if c_pad != c:
        w3p = jnp.pad(w3, ((0, 0), (0, c_pad - c)))
        b3p = jnp.pad(b3, ((0, 0), (0, c_pad - c)))

    itemsize = x.dtype.itemsize
    w_itemsize = w1.dtype.itemsize
    tile_io = tb * (e + c_pad) * itemsize
    w_bytes = w_itemsize * (e * h + h + h * h + h + h * c_pad + c_pad)
    interm = 2 * tb * h * 4             # f32 activation temporaries
    vmem_limit = _derive_vmem_limit(tile_io, w_bytes, interm)

    out = pl.pallas_call(
        _classifier_relu_kernel,
        out_shape=jax.ShapeDtypeStruct((b_pad, c_pad), x.dtype),
        grid_spec=pltpu.PrefetchScalarGridSpec(
            num_scalar_prefetch=0,
            grid=(b_pad // tb,),
            in_specs=[
                pl.BlockSpec((tb, e), lambda i: (i, 0)),
                _weight_spec((e, h)),
                _weight_spec((1, h)),
                _weight_spec((h, h)),
                _weight_spec((1, h)),
                _weight_spec((h, c_pad)),
                _weight_spec((1, c_pad)),
            ],
            out_specs=pl.BlockSpec((tb, c_pad), lambda i: (i, 0)),
        ),
        compiler_params=pltpu.CompilerParams(
            dimension_semantics=("parallel",),
            vmem_limit_bytes=vmem_limit,
        ),
    )(xp, w1, b1, w2, b2, w3p, b3p)
    return out[:b, :c]


def classifier_swish(x, w1, b1, w2, b2):
    """'swish' Clasifier: x:(B,E), w1:(E,H), w2:(H,C); biases (1,.)."""
    b, e = x.shape
    h = w1.shape[1]
    c = w2.shape[1]

    b_pad, tb = _batch_tiling(b)
    c_pad = _round_up(c, 128)

    xp = x if b_pad == b else jnp.pad(x, ((0, b_pad - b), (0, 0)))
    w2p, b2p = w2, b2
    if c_pad != c:
        w2p = jnp.pad(w2, ((0, 0), (0, c_pad - c)))
        b2p = jnp.pad(b2, ((0, 0), (0, c_pad - c)))

    itemsize = x.dtype.itemsize
    w_itemsize = w1.dtype.itemsize
    tile_io = tb * (e + c_pad) * itemsize
    w_bytes = w_itemsize * (e * h + h + h * c_pad + c_pad)
    interm = 2 * tb * h * 4
    vmem_limit = _derive_vmem_limit(tile_io, w_bytes, interm)

    out = pl.pallas_call(
        _classifier_swish_kernel,
        out_shape=jax.ShapeDtypeStruct((b_pad, c_pad), x.dtype),
        grid_spec=pltpu.PrefetchScalarGridSpec(
            num_scalar_prefetch=0,
            grid=(b_pad // tb,),
            in_specs=[
                pl.BlockSpec((tb, e), lambda i: (i, 0)),
                _weight_spec((e, h)),
                _weight_spec((1, h)),
                _weight_spec((h, c_pad)),
                _weight_spec((1, c_pad)),
            ],
            out_specs=pl.BlockSpec((tb, c_pad), lambda i: (i, 0)),
        ),
        compiler_params=pltpu.CompilerParams(
            dimension_semantics=("parallel",),
            vmem_limit_bytes=vmem_limit,
        ),
    )(xp, w1, b1, w2p, b2p)
    return out[:b, :c]


# ----------------------------------------------------------------------------
# Pure-JAX references (mirror the PyTorch forward, inference mode)
# ----------------------------------------------------------------------------
def _reference_relu(x, w1, b1, w2, b2, w3, b3):
    xf = x.astype(jnp.float32)
    h1 = jnp.maximum(xf @ w1.astype(jnp.float32) + b1, 0.0)
    h2 = jnp.maximum(h1 @ w2.astype(jnp.float32) + b2, 0.0)
    return (h2 @ w3.astype(jnp.float32) + b3).astype(x.dtype)


def _reference_swish(x, w1, b1, w2, b2):
    xf = x.astype(jnp.float32)
    h = xf @ w1.astype(jnp.float32) + b1
    gate = jnp.clip(jax.nn.sigmoid(h), EPSILON_FP16, 1.0 - EPSILON_FP16)
    h = h * gate
    return (h @ w2.astype(jnp.float32) + b2).astype(x.dtype)


# ----------------------------------------------------------------------------
# Test
# ----------------------------------------------------------------------------
if __name__ == "__main__":
    key = jax.random.PRNGKey(0)
    B, E, H, C = 16, 256, 256, 128  # batch, nn_embed_size, hidden_dims, classes_num
    C_SMALL = 10                     # exercise the lane-padding path
    ks = jax.random.split(key, 10)

    x = jax.random.normal(ks[0], (B, E), dtype=jnp.float32)

    # Weights already in (in_features, out_features) layout (i.e. torch W.T),
    # scaled like torch's default Linear init.
    def init_w(k, fan_in, fan_out):
        bound = 1.0 / jnp.sqrt(fan_in)
        return jax.random.uniform(k, (fan_in, fan_out), jnp.float32, -bound, bound)

    def init_b(k, fan_in, fan_out):
        bound = 1.0 / jnp.sqrt(fan_in)
        return jax.random.uniform(k, (1, fan_out), jnp.float32, -bound, bound)

    w1, b1 = init_w(ks[1], E, H), init_b(ks[2], E, H)
    w2, b2 = init_w(ks[3], H, H), init_b(ks[4], H, H)
    w3, b3 = init_w(ks[5], H, C), init_b(ks[6], H, C)
    ws, bs = init_w(ks[7], H, C_SMALL), init_b(ks[8], H, C_SMALL)

    # 'relu' classifier (3-layer path)
    out_relu = jax.block_until_ready(classifier_relu(x, w1, b1, w2, b2, w3, b3))
    ref_relu = _reference_relu(x, w1, b1, w2, b2, w3, b3)
    assert out_relu.shape == (B, C) and out_relu.dtype == x.dtype
    assert jnp.allclose(out_relu, ref_relu, atol=1e-3, rtol=1e-3), "relu mismatch"

    # 'swish' classifier (2-layer path) with a non-lane-aligned class count,
    # exercising the output-padding + slice path.
    out_swish = jax.block_until_ready(classifier_swish(x, w1, b1, ws, bs))
    ref_swish = _reference_swish(x, w1, b1, ws, bs)
    assert out_swish.shape == (B, C_SMALL) and out_swish.dtype == x.dtype
    assert jnp.allclose(out_swish, ref_swish, atol=1e-3, rtol=1e-3), "swish mismatch"

    print("KERNEL_OK")
</pallas_src>

<mosaic_0001>
module attributes {stable_mosaic.version = 11 : i64} {
  func.func @_classifier_relu_kernel(%arg0: i32, %arg1: memref<8x256xf32, #tpu.memory_space<vmem>>, %arg2: memref<256x256xf32, #tpu.memory_space<vmem>>, %arg3: memref<1x256xf32, #tpu.memory_space<vmem>>, %arg4: memref<256x256xf32, #tpu.memory_space<vmem>>, %arg5: memref<1x256xf32, #tpu.memory_space<vmem>>, %arg6: memref<256x128xf32, #tpu.memory_space<vmem>>, %arg7: memref<1x128xf32, #tpu.memory_space<vmem>>, %arg8: memref<8x128xf32, #tpu.memory_space<vmem>>) attributes {dimension_semantics = [#tpu.dimension_semantics<parallel>], iteration_bounds = array<i64: 2>, scalar_prefetch = 0 : i64, scratch_operands = 0 : i64, tpu.core_type = #tpu.core_type<tc>, window_params = [{transform_indices = @transform_0, window_bounds = array<i64: 8, 256>}, {pipeline_mode = #tpu.pipeline_mode<synchronous>, transform_indices = @transform_1, window_bounds = array<i64: 256, 256>}, {pipeline_mode = #tpu.pipeline_mode<synchronous>, transform_indices = @transform_2, window_bounds = array<i64: 1, 256>}, {pipeline_mode = #tpu.pipeline_mode<synchronous>, transform_indices = @transform_3, window_bounds = array<i64: 256, 256>}, {pipeline_mode = #tpu.pipeline_mode<synchronous>, transform_indices = @transform_4, window_bounds = array<i64: 1, 256>}, {pipeline_mode = #tpu.pipeline_mode<synchronous>, transform_indices = @transform_5, window_bounds = array<i64: 256, 128>}, {pipeline_mode = #tpu.pipeline_mode<synchronous>, transform_indices = @transform_6, window_bounds = array<i64: 1, 128>}, {transform_indices = @transform_7, window_bounds = array<i64: 8, 128>}]} {
    %c0 = arith.constant 0 : index
    %c0_0 = arith.constant 0 : index
    %0 = vector.load %arg1[%c0, %c0_0] : memref<8x256xf32, #tpu.memory_space<vmem>>, vector<8x256xf32>
    %c0_1 = arith.constant 0 : index
    %c0_2 = arith.constant 0 : index
    %1 = vector.load %arg2[%c0_1, %c0_2] : memref<256x256xf32, #tpu.memory_space<vmem>>, vector<256x256xf32>
    %cst = arith.constant dense<0.000000e+00> : vector<8x256xf32>
    %2 = tpu.matmul %0, %1, %cst {dimension_numbers = #tpu.dot_dimension_numbers<[1], [0], [0], [1], [0, 0, 1, 1], [], []>} : vector<8x256xf32>, vector<256x256xf32>, vector<8x256xf32> -> vector<8x256xf32>
    %c0_3 = arith.constant 0 : index
    %c0_4 = arith.constant 0 : index
    %3 = vector.load %arg3[%c0_3, %c0_4] : memref<1x256xf32, #tpu.memory_space<vmem>>, vector<1x256xf32>
    %4 = vector.broadcast %3 : vector<1x256xf32> to vector<8x256xf32>
    %5 = arith.addf %2, %4 : vector<8x256xf32>
    %cst_5 = arith.constant 0.000000e+00 : f32
    %6 = vector.broadcast %cst_5 : f32 to vector<8x256xf32>
    %7 = arith.maximumf %5, %6 : vector<8x256xf32>
    %c0_6 = arith.constant 0 : index
    %c0_7 = arith.constant 0 : index
    %8 = vector.load %arg4[%c0_6, %c0_7] : memref<256x256xf32, #tpu.memory_space<vmem>>, vector<256x256xf32>
    %cst_8 = arith.constant dense<0.000000e+00> : vector<8x256xf32>
    %9 = tpu.matmul %7, %8, %cst_8 {dimension_numbers = #tpu.dot_dimension_numbers<[1], [0], [0], [1], [0, 0, 1, 1], [], []>} : vector<8x256xf32>, vector<256x256xf32>, vector<8x256xf32> -> vector<8x256xf32>
    %c0_9 = arith.constant 0 : index
    %c0_10 = arith.constant 0 : index
    %10 = vector.load %arg5[%c0_9, %c0_10] : memref<1x256xf32, #tpu.memory_space<vmem>>, vector<1x256xf32>
    %11 = vector.broadcast %10 : vector<1x256xf32> to vector<8x256xf32>
    %12 = arith.addf %9, %11 : vector<8x256xf32>
    %cst_11 = arith.constant 0.000000e+00 : f32
    %13 = vector.broadcast %cst_11 : f32 to vector<8x256xf32>
    %14 = arith.maximumf %12, %13 : vector<8x256xf32>
    %c0_12 = arith.constant 0 : index
    %c0_13 = arith.constant 0 : index
    %15 = vector.load %arg6[%c0_12, %c0_13] : memref<256x128xf32, #tpu.memory_space<vmem>>, vector<256x128xf32>
    %cst_14 = arith.constant dense<0.000000e+00> : vector<8x128xf32>
    %16 = tpu.matmul %14, %15, %cst_14 {dimension_numbers = #tpu.dot_dimension_numbers<[1], [0], [0], [1], [0, 0, 1, 1], [], []>} : vector<8x256xf32>, vector<256x128xf32>, vector<8x128xf32> -> vector<8x128xf32>
    %c0_15 = arith.constant 0 : index
    %c0_16 = arith.constant 0 : index
    %17 = vector.load %arg7[%c0_15, %c0_16] : memref<1x128xf32, #tpu.memory_space<vmem>>, vector<1x128xf32>
    %18 = vector.broadcast %17 : vector<1x128xf32> to vector<8x128xf32>
    %19 = arith.addf %16, %18 : vector<8x128xf32>
    %c0_17 = arith.constant 0 : index
    %c0_18 = arith.constant 0 : index
    %20 = vector.load %arg8[%c0_17, %c0_18] : memref<8x128xf32, #tpu.memory_space<vmem>>, vector<8x128xf32>
    tpu.vector_store %arg8[%c0_17, %c0_18], %19 {strides = array<i32>} : memref<8x128xf32, #tpu.memory_space<vmem>>, vector<8x128xf32>,
    return
  }
  func.func @transform_0(%arg0: i32) -> (i32, i32) {
    %c0_i32 = arith.constant 0 : i32
    %c0_i32_0 = arith.constant 0 : i32
    return %arg0, %c0_i32 : i32, i32
  }
  func.func @transform_1(%arg0: i32) -> (i32, i32) {
    %c0_i32 = arith.constant 0 : i32
    %c0_i32_0 = arith.constant 0 : i32
    %c0_i32_1 = arith.constant 0 : i32
    return %c0_i32, %c0_i32_0 : i32, i32
  }
  func.func @transform_2(%arg0: i32) -> (i32, i32) {
    %c0_i32 = arith.constant 0 : i32
    %c0_i32_0 = arith.constant 0 : i32
    %c0_i32_1 = arith.constant 0 : i32
    return %c0_i32, %c0_i32_0 : i32, i32
  }
  func.func @transform_3(%arg0: i32) -> (i32, i32) {
    %c0_i32 = arith.constant 0 : i32
    %c0_i32_0 = arith.constant 0 : i32
    %c0_i32_1 = arith.constant 0 : i32
    return %c0_i32, %c0_i32_0 : i32, i32
  }
  func.func @transform_4(%arg0: i32) -> (i32, i32) {
    %c0_i32 = arith.constant 0 : i32
    %c0_i32_0 = arith.constant 0 : i32
    %c0_i32_1 = arith.constant 0 : i32
    return %c0_i32, %c0_i32_0 : i32, i32
  }
  func.func @transform_5(%arg0: i32) -> (i32, i32) {
    %c0_i32 = arith.constant 0 : i32
    %c0_i32_0 = arith.constant 0 : i32
    %c0_i32_1 = arith.constant 0 : i32
    return %c0_i32, %c0_i32_0 : i32, i32
  }
  func.func @transform_6(%arg0: i32) -> (i32, i32) {
    %c0_i32 = arith.constant 0 : i32
    %c0_i32_0 = arith.constant 0 : i32
    %c0_i32_1 = arith.constant 0 : i32
    return %c0_i32, %c0_i32_0 : i32, i32
  }
  func.func @transform_7(%arg0: i32) -> (i32, i32) {
    %c0_i32 = arith.constant 0 : i32
    %c0_i32_0 = arith.constant 0 : i32
    return %arg0, %c0_i32 : i32, i32
  }
}

</mosaic_0001>

<bundles_post_ra>
// kernel: tpu_custom_call.1
= control target key start
LH: loop header
LB: loop body
LE: loop exit
PB: predicated region body
PF: predicated region fallthrough
CT: control target
= control target key end

     0   :  { %12 = vsyncpa [#allocation3], 0  ;;  %s1666_s0 = inlined_call_operand.hbm [shape: f32[16,256], index: 0, kind: input, shape index: {}]   ;;  %s1667_s1 = inlined_call_operand.hbm [shape: f32[256,256], index: 1, kind: input, shape index: {}]   ;;  %s1668_s2 = inlined_call_operand.vmem [shape: f32[1,256], index: 2, kind: input, shape index: {}]   ;;  %s1669_s3 = inlined_call_operand.hbm [shape: f32[256,256], index: 3, kind: input, shape index: {}]   ;;  %s1670_s4 = inlined_call_operand.vmem [shape: f32[1,256], index: 4, kind: input, shape index: {}]   ;;  %s1671_s5 = inlined_call_operand.hbm [shape: f32[256,128], index: 5, kind: input, shape index: {}]   ;;  %s1672_s6 = inlined_call_operand.vmem [shape: f32[1,128], index: 6, kind: input, shape index: {}]   ;;  %s1673_s7 = inlined_call_operand.hbm [shape: f32[16,128], index: 7, kind: output, shape index: {}]  }
   0x1   :  { %14 = vsyncpa [#allocation3 + $0x1], 0 }
   0x2   :  { %15 = vsyncpa [#allocation6], 0 }
   0x3   :  { %16 = vsyncpa [#allocation9], 0 }
   0x4   :  { %17 = vsyncpa [#allocation4], 0 }
   0x5   :  { %19 = vsyncpa [#allocation4 + $0x1], 0  ;;  %s1398_s24 = smov 0   ;;  %s1400_s25 = smov 0  }
   0x6   :  { %s1402_s26 = smov 0   ;;  %s1404_s27 = smov 0  }
   0x7 LB: > { %s1419_s28 = sadd.s32 4294967295, %s1347_s27   ;;  %s862_s29 = sadd.s32 4294967294, %s1347_s27   ;;  %s1347_s27 = sphi %s1404_s27, %s1699_s27   ;;  %s1343_s26 = sphi %s1402_s26, %s1698_s26   ;;  %s1339_s25 = sphi %s1400_s25, %s1697_s25   ;;  %s1335_s24 = sphi %s1398_s24, %s1696_s24  }
   0x8   : > { %p45_p0 = scmp.ne.s32.totalorder %s1339_s25, %s1335_s24  ;;  %p1674_p1 = scmp.eq.s32.totalorder %s1419_s28, 0 }
   0x9   : > { %p201_p3 = scmp.eq.s32.totalorder %s862_s29, 1  ;;  %p863_p5 = scmp.ge.s32.totalorder %s1347_s27, 1 }
   0xa   : > { %p1428_p4 = por %p1674_p1, %p45_p0  ;;  %p208_p7 = scmp.lt.s32.totalorder %s1347_s27, 3 }
   0xb   : > { %p1433_p6 = por %p201_p3, %p45_p0  ;;  %s1349_s10 = smov [#allocation5]  }
   0xc   : > { %s1678_s30 = scalar_select %p1428_p4, 1, 0 }
   0xd   : > { %s1679_s8 = scalar_select %p1433_p6, 1, 0 }
   0xe   : > { %p1438_p8 = pnand %p863_p5, %p208_p7  ;;  %s220_s11 = sshll.u32 %s1349_s10, 4  ;;  %s1442_s11 = int_to_ptr.vmem [resolvable:$true] %s220_s11 }
   0xf   : > { %1680 = sst [smem:[#allocation15_spill]] %s1679_s8  ;;  %s1350_s13 = smov [#allocation7]  }
  0x10   : > { %s1681_s9 = scalar_select %p1438_p8, 1, 0 }
  0x11   : > { %p1094_p9 = pneg %p1438_p8  ;;  %s236_s14 = sshll.u32 %s1350_s13, 4  ;;  %s1453_s14 = int_to_ptr.vmem [resolvable:$true] %s236_s14 }
  0x12   : > { %s1351_s15 = smov [#allocation8]   ;;  %s1159_s19 = scalar_lea.hbm %s1667_s1, 8192 }
  0x13   : > { %p1449_p11 = pnand %p1094_p9, %p1674_p1  ;;  %s1455_s16 = sshll.u32 %s1351_s15, 4  ;;  %s253_s16 = int_to_ptr.vmem [resolvable:$true] %s1455_s16 }
  0x14   : > { %p1160_p12 = scmp.ne.s32.totalorder %s1667_s1, %s1159_s19  ;;  %p1166_p5 = scmp.lt.u32.totalorder %s1159_s19, %s1667_s1 }
  0x15   : > { %p1465_p13 = pneg %p1449_p11 }
  0x17   : > { %p1162_p0 = pnand %p1465_p13, %p1160_p12 }
  0x19   : > { %p1163_p3 = pneg %p1162_p0 }
  0x1b   : > { %p1168_p7 = pnand %p1166_p5, %p1163_p3 }
  0x1d   : > { %1171 = shalt.err (!%p1168_p7)
}
  0x1e   : > { %s1172_s10 = scalar_lea.vmem %s1442_s11, 8192  ;;  %p1180_p2 = scmp.lt.s32.totalorder %s1442_s11, %s1442_s11 }
  0x1f   : > { %p1173_p9 = scmp.ne.s32.totalorder %s1442_s11, %s1172_s10  ;;  %p1181_p6 = scmp.lt.s32.totalorder %s1172_s10, %s1172_s10 }
  0x21   : > { %p1175_p10 = pnand %p1173_p9, %p1465_p13  ;;  %p1182_p12 = por %p1181_p6, %p1180_p2 }
  0x23   : > { %p1176_p1 = pneg %p1175_p10 }
  0x25   : > { %p1183_p0 = pnand %p1182_p12, %p1176_p1 }
  0x27   : > { %1186 = shalt.err (!%p1183_p0)
}
  0x28   : > { %s1352_s13 = smov 256   ;;  %s1353_s15 = smov 16  }
  0x29   : > { %1097 = dma.hbm_to_vmem [thread:$0]  (!%p1449_p11), %s1667_s1, 8192, %s1442_s11, [#allocation6], %s1352_s13, %s1352_s13, %s1353_s15  }
  0x2a   : > { %s1187_s21 = scalar_lea.hbm %s1669_s3, 8192 }
  0x2b   : > { %p1188_p2 = scmp.ne.s32.totalorder %s1669_s3, %s1187_s21  ;;  %p1194_p10 = scmp.lt.u32.totalorder %s1187_s21, %s1669_s3 }
  0x2d   : > { %p1190_p1 = pnand %p1188_p2, %p1465_p13 }
  0x2f   : > { %p1191_p6 = pneg %p1190_p1 }
  0x31   : > { %p1196_p3 = pnand %p1194_p10, %p1191_p6 }
  0x33   : > { %1199 = shalt.err (!%p1196_p3)
}
  0x34   : > { %s1200_s11 = scalar_lea.vmem %s1453_s14, 8192  ;;  %p1208_p12 = scmp.lt.s32.totalorder %s1453_s14, %s1453_s14 }
  0x35   : > { %p1201_p5 = scmp.ne.s32.totalorder %s1453_s14, %s1200_s11  ;;  %p1209_p0 = scmp.lt.s32.totalorder %s1200_s11, %s1200_s11 }
  0x37   : > { %p1203_p7 = pnand %p1201_p5, %p1465_p13  ;;  %p1210_p2 = por %p1209_p0, %p1208_p12 }
  0x39   : > { %p1204_p9 = pneg %p1203_p7 }
  0x3b   : > { %p1211_p1 = pnand %p1210_p2, %p1204_p9 }
  0x3d   : > { %1214 = shalt.err (!%p1211_p1)
}
  0x3e   : > { %1100 = dma.hbm_to_vmem [thread:$0]  (!%p1449_p11), %s1669_s3, 8192, %s1453_s14, [#allocation6], %s1352_s13, %s1352_s13, %s1353_s15  }
  0x3f   : > { %s1215_s20 = scalar_lea.hbm %s1671_s5, 4096 }
  0x40   : > { %p1216_p6 = scmp.ne.s32.totalorder %s1671_s5, %s1215_s20  ;;  %p1222_p5 = scmp.lt.u32.totalorder %s1215_s20, %s1671_s5 }
  0x42   : > { %p1218_p10 = pnand %p1216_p6, %p1465_p13 }
  0x44   : > { %p1219_p3 = pneg %p1218_p10 }
  0x46   : > { %p1224_p7 = pnand %p1222_p5, %p1219_p3 }
  0x48   : > { %1227 = shalt.err (!%p1224_p7)
}
  0x49   : > { %s1228_s11 = scalar_lea.vmem %s253_s16, 4096  ;;  %p1236_p2 = scmp.lt.s32.totalorder %s253_s16, %s253_s16 }
  0x4a   : > { %p1229_p9 = scmp.ne.s32.totalorder %s253_s16, %s1228_s11  ;;  %p1237_p1 = scmp.lt.s32.totalorder %s1228_s11, %s1228_s11 }
  0x4c   : > { %p1231_p12 = pnand %p1229_p9, %p1465_p13  ;;  %p1238_p4 = por %p1237_p1, %p1236_p2 }
  0x4e   : > { %p1232_p0 = pneg %p1231_p12 }
  0x50   : > { %p1239_p8 = pnand %p1238_p4, %p1232_p0 }
  0x52   : > { %1242 = shalt.err (!%p1239_p8)
}
  0x53   : > { %s1354_s14 = smov 128   ;;  %s1355_s22 = smov 8  }
  0x54   : > { %1103 = dma.hbm_to_vmem [thread:$0]  (!%p1449_p11), %s1671_s5, 4096, %s253_s16, [#allocation9], %s1354_s14, %s1354_s14, %s1355_s22  }
  0x55   : > { %s1529_s8 = sadd.s32 1, %s1347_s27   ;;  %s32_s18 = sadd.s32 1, %s1343_s26 }
  0x56   : > { %s29_s17 = ssub.s32 %s1347_s27, %s1529_s8  ;;  %p39_p8 = scmp.ne.s32.totalorder %s1343_s26, %s1339_s25 }
  0x57   : > { %p30_p4 = scmp.eq.s32.totalorder %s29_s17, 0  ;;  %p40_p13 = scmp.eq.s32.totalorder %s1347_s27, 0 }
  0x58   : > { %p1115_p6 = scmp.lt.s32.totalorder %s1347_s27, 2  ;;  %p1684_p3 = scmp.eq.s32.totalorder %s1419_s28, 1 }
  0x59   : > { %s1539_s19 = scalar_select %p30_p4, %s1343_s26, %s32_s18  }
  0x5a   : > { %p41_p10 = por %p40_p13, %p39_p8  ;;  %p1543_p5 = por %p1684_p3, %p39_p8 }
  0x5b   : > { %s269_s12 = sand.u32 1, %s1343_s26   ;;  %s882_s21 = sshll.u32 %s1347_s27, 8 }
  0x5c   : > { %s868_s16 = sshll.u32 %s269_s12, 4  ;;  %s1552_s10 = scalar_lea.hbm %s1666_s0, %s882_s21 }
  0x5d   : > { %s273_s11 = scalar_lea.vmem [#allocation2], %s868_s16  ;;  %p1554_p11 = pnand %p1115_p6, %p41_p10 }
  0x5e   : > { %s281_s14 = sshll.u32 %s273_s11, 4  ;;  %s270_s13 = scalar_lea.sflag [#allocation3], %s269_s12  ;;  %s1558_s14 = int_to_ptr.vmem [resolvable:$true] %s281_s14 }
  0x5f   : > { %s1243_s15 = scalar_lea.hbm %s1552_s10, 256  ;;  %p1245_p9 = pneg %p1554_p11 }
  0x60   : > { %p1244_p7 = scmp.ne.s32.totalorder %s1552_s10, %s1243_s15  ;;  %s1248_s21 = scalar_lea.hbm %s1666_s0, 512 }
  0x61   : > { %p1249_p2 = scmp.lt.u32.totalorder %s1552_s10, %s1666_s0  ;;  %p1250_p1 = scmp.lt.u32.totalorder %s1248_s21, %s1243_s15 }
  0x62   : > { %p1246_p12 = pnand %p1245_p9, %p1244_p7  ;;  %p1252_p8 = scmp.lt.u32.totalorder %s1243_s15, %s1552_s10 }
  0x63   : > { %p1251_p4 = por %p1250_p1, %p1249_p2 }
  0x64   : > { %p1247_p0 = pneg %p1246_p12 }
  0x65   : > { %p1253_p13 = por %p1252_p8, %p1251_p4 }
  0x67   : > { %p1254_p6 = pnand %p1253_p13, %p1247_p0 }
  0x69   : > { %1257 = shalt.err (!%p1254_p6)
}
  0x6a   : > { %s1258_s12 = scalar_lea.vmem %s1558_s14, 256  ;;  %s1356_s29 = smov [#allocation2]  }
  0x6b   : > { %p1259_p10 = scmp.ne.s32.totalorder %s1558_s14, %s1258_s12  ;;  %s1263_s11 = sshll.u32 %s1356_s29, 4  ;;  %s1264_s11 = int_to_ptr.vmem [resolvable:$false] %s1263_s11 }
  0x6c   : > { %s1265_s17 = scalar_lea.vmem %s1264_s11, 512  ;;  %p1266_p12 = scmp.lt.s32.totalorder %s1558_s14, %s1264_s11 }
  0x6d   : > { %p1261_p3 = pnand %p1259_p10, %p1245_p9  ;;  %p1267_p2 = scmp.lt.s32.totalorder %s1265_s17, %s1258_s12 }
  0x6f   : > { %p1262_p7 = pneg %p1261_p3  ;;  %p1268_p1 = por %p1267_p2, %p1266_p12 }
  0x71   : > { %p1269_p4 = pnand %p1268_p1, %p1262_p7 }
  0x73   : > { %1272 = shalt.err (!%p1269_p4)
}
  0x74   : > { %1107 = dma.hbm_to_vmem [thread:$0]  (!%p1554_p11), %s1552_s10, 256, %s1558_s14, %s270_s13  }
  0x75   : > { %p1687_p0 = scmp.ne.s32.totalorder %s1681_s9, 0 }
  0x76   : > { %s1588_s15 = sand.u32 (!%p1687_p0), 1, %s1339_s25   ;;  %p1688_p9 = scmp.ne.s32.totalorder (!%p1687_p0), %s1678_s30, 0 }
  0x77   : > { %290 = sbr.rel (%p1687_p0) target bundleno = 868 (0x364), region = 48  ;;  %s872_s18 = sshll.u32 (!%p1687_p0), %s1588_s15, 4 }
  0x78   : > { %s293_s21 = scalar_lea.sflag (!%p1687_p0), [#allocation3], %s1588_s15  ;;  %s1592_s16 = scalar_lea.vmem (!%p1687_p0), [#allocation2], %s872_s18 }
  0x7e   : > { %1318 = dma.done.wait (%p1688_p9), %s293_s21, 256  }
  0x7f   : > { %1320 = vsyncadd (%p1688_p9), %s293_s21, 4294967040  ;;  %p1689_p11 = scmp.eq.s32.totalorder %s1419_s28, 0 }
  0x81   : > { %1322 = dma.done.wait (%p1689_p11), [#allocation6], 16384   ;;  %p1690_p8 = pmov %p1689_p11 }
  0x83   : > { %1324 = vsyncadd (%p1690_p8), [#allocation6], 4294950912  ;;  %p1691_p13 = pmov %p1690_p8 }
  0x84   : > { %p1692_p6 = pmov %p1690_p8 }
  0x85   : > { %1326 = dma.done.wait (%p1691_p13), [#allocation9], 4096  }
  0x86   : > { %1328 = vsyncadd (%p1692_p6), [#allocation9], 4294963200  ;;  %v342_v0 = vld [vmem:[#allocation5 + $0x8] sm:$0xff]  ;;  %v344_v1 = vld [vmem:[#allocation5 + $0x18] sm:$0xff]  ;;  %s876_s22 = sshll.u32 %s1588_s15, 3  ;;  %s879_s12 = sshll.u32 %s1419_s28, 7 }
  0x87   : > { %v341_v2 = vld [vmem:[#allocation5] sm:$0xff]  ;;  %v918_v3 = vpack.c.bf16 %v344_v1, %v342_v0  ;;  %v343_v4 = vld [vmem:[#allocation5 + $0x10] sm:$0xff]  ;;  %v346_v5 = vld [vmem:[#allocation5 + $0x28] sm:$0xff]  ;;  %s338_s29 = scalar_lea.vmem [#allocation10], %s876_s22  ;;  %s1622_s21 = scalar_lea.hbm %s1673_s7, %s879_s12 }
  0x88   : > { %v348_v6 = vld [vmem:[#allocation5 + $0x38] sm:$0xff]  ;;  %v920_v7 = vpack.c.bf16 %v343_v4, %v341_v2  ;;  %v345_v9 = vld [vmem:[#allocation5 + $0x20] sm:$0xff]  ;;  %v347_v10 = vld [vmem:[#allocation5 + $0x30] sm:$0xff]  ;;  %s763_s11 = sshll.u32 %s338_s29, 4  ;;  %s1357_s28 = smov [#allocation10]   ;;  %s1624_s11 = int_to_ptr.vmem [resolvable:$true] %s763_s11 }
  0x89   : > { %v922_v8 = vpack.c.bf16 %v348_v6, %v346_v5  ;;  %v350_v11 = vld [vmem:[#allocation5 + $0x48] sm:$0xff]  ;;  %919 = vmatprep.subr.bf16.mxu0 %v918_v3  ;;  %v352_v12 = vld [vmem:[#allocation5 + $0x58] sm:$0xff]  ;;  %v924_v13 = vpack.c.bf16 %v347_v10, %v345_v9  ;;  %v349_v15 = vld [vmem:[#allocation5 + $0x40] sm:$0xff]  ;;  %s1273_s30 = scalar_lea.vmem %s1624_s11, 128  ;;  %s1277_s9 = sshll.u32 %s1357_s28, 4  ;;  %s1278_s9 = int_to_ptr.vmem [resolvable:$false] %s1277_s9 }
  0x8a   : > { %921 = vmatpush1.bf16.msra.mxu0 %v920_v7  ;;  %v926_v14 = vpack.c.bf16 %v352_v12, %v350_v11  ;;  %v351_v16 = vld [vmem:[#allocation5 + $0x50] sm:$0xff]  ;;  %v354_v17 = vld [vmem:[#allocation5 + $0x68] sm:$0xff]  ;;  %v356_v18 = vld [vmem:[#allocation5 + $0x78] sm:$0xff]  ;;  %p1274_p10 = scmp.ne.s32.totalorder %s1624_s11, %s1273_s30  ;;  %s1279_s10 = scalar_lea.vmem %s1278_s9, 256 }
  0x8b   : > { %923 = vmatprep.subr.bf16.mxu0 %v922_v8  ;;  %v928_v19 = vpack.c.bf16 %v351_v16, %v349_v15  ;;  %v930_v20 = vpack.c.bf16 %v356_v18, %v354_v17  ;;  %v353_v21 = vld [vmem:[#allocation5 + $0x60] sm:$0xff]  ;;  %v355_v22 = vld [vmem:[#allocation5 + $0x70] sm:$0xff]  ;;  %v358_v23 = vld [vmem:[#allocation5 + $0x88] sm:$0xff]  ;;  %p1280_p12 = scmp.lt.s32.totalorder %s1624_s11, %s1278_s9  ;;  %p1281_p2 = scmp.lt.s32.totalorder %s1279_s10, %s1273_s30 }
  0x8c   : > { %v360_v24 = vld [vmem:[#allocation5 + $0x98] sm:$0xff]  ;;  %v932_v25 = vpack.c.bf16 %v355_v22, %v353_v21  ;;  %v357_v27 = vld [vmem:[#allocation5 + $0x80] sm:$0xff]  ;;  %v359_v28 = vld [vmem:[#allocation5 + $0x90] sm:$0xff]  ;;  %p1275_p3 = pnand %p1274_p10, %p1543_p5 }
  0x8d   : > { %v934_v26 = vpack.c.bf16 %v360_v24, %v358_v23  ;;  %v362_v29 = vld [vmem:[#allocation5 + $0xa8] sm:$0xff]  ;;  %v364_v30 = vld [vmem:[#allocation5 + $0xb8] sm:$0xff]  ;;  %v936_v31 = vpack.c.bf16 %v359_v28, %v357_v27  ;;  %v361_v33 = vld [vmem:[#allocation5 + $0xa0] sm:$0xff]  ;;  %p1282_p1 = por %p1281_p2, %p1280_p12 }
  0x8e   : > { %925 = vmatpush1.bf16.msra.mxu0 %v924_v13  ;;  %v938_v32 = vpack.c.bf16 %v364_v30, %v362_v29  ;;  %v363_v34 = vld [vmem:[#allocation5 + $0xb0] sm:$0xff]  ;;  %v366_v35 = vld [vmem:[#allocation5 + $0xc8] sm:$0xff]  ;;  %v368_v36 = vld [vmem:[#allocation5 + $0xd8] sm:$0xff]  ;;  %p1276_p7 = pneg %p1275_p3 }
  0x8f   : > { %927 = vmatprep.subr.bf16.mxu0 %v926_v14  ;;  %v940_v37 = vpack.c.bf16 %v363_v34, %v361_v33  ;;  %v365_v38 = vld [vmem:[#allocation5 + $0xc0] sm:$0xff]  ;;  %v367_v39 = vld [vmem:[#allocation5 + $0xd0] sm:$0xff]  ;;  %v942_v40 = vpack.c.bf16 %v368_v36, %v366_v35  ;;  %v370_v41 = vld [vmem:[#allocation5 + $0xe8] sm:$0xff] }
  0x90   : > { %v372_v42 = vld [vmem:[#allocation5 + $0xf8] sm:$0xff]  ;;  %v491_v44 = vld [vmem:[#allocation7 + $0x8] sm:$0xff]  ;;  %v490_v46 = vld [vmem:[#allocation7] sm:$0xff]  ;;  %v944_v51 = vpack.c.bf16 %v367_v39, %v365_v38  ;;  %p1283_p4 = pnand %p1282_p1, %p1276_p7 }
  0x91   : > { %v340_v43 = vld [vmem:[%s1592_s16 + $0x8] sm:$0xff]  ;;  %v492_v48 = vld [vmem:[#allocation7 + $0x10] sm:$0xff]  ;;  %v494_v54 = vld [vmem:[#allocation7 + $0x20] sm:$0xff]  ;;  %v946_v57 = vpack.c.bf16 %v372_v42, %v370_v41 }
  0x92   : > { %929 = vmatpush1.bf16.msra.mxu0 %v928_v19  ;;  %481 = vmatprep.mubr.f32.mxu0 %v340_v43  ;;  %v493_v45 = vld [vmem:[#allocation7 + $0x18] sm:$0xff]  ;;  %v495_v49 = vld [vmem:[#allocation7 + $0x28] sm:$0xff]  ;;  %v984_v52 = vpack.c.bf16 %v492_v48, %v490_v46  ;;  %v496_v55 = vld [vmem:[#allocation7 + $0x30] sm:$0xff] }
  0x93   : > { %931 = vmatprep.subr.bf16.mxu0 %v930_v20  ;;  %v982_v47 = vpack.c.bf16 %v493_v45, %v491_v44  ;;  %v497_v50 = vld [vmem:[#allocation7 + $0x38] sm:$0xff]  ;;  %v499_v56 = vld [vmem:[#allocation7 + $0x48] sm:$0xff]  ;;  %v369_v58 = vld [vmem:[#allocation5 + $0xe0] sm:$0xff]  ;;  %v988_v63 = vpack.c.bf16 %v496_v55, %v494_v54 }
  0x94   : > { %v986_v53 = vpack.c.bf16 %v497_v50, %v495_v49  ;;  %v371_v59 = vld [vmem:[#allocation5 + $0xf0] sm:$0xff]  ;;  %v501_v60 = vld [vmem:[#allocation7 + $0x58] sm:$0xff]  ;;  %v374_v61 = vld [vmem:[#allocation5 + $0x108] sm:$0xff] }
  0x95   : > { %983 = vmatprep.subr.bf16.mxu1 %v982_v47  ;;  %v376_v62 = vld [vmem:[#allocation5 + $0x118] sm:$0xff]  ;;  %v990_v0 = vpack.c.bf16 %v501_v60, %v499_v56  ;;  %v498_v1 = vld [vmem:[#allocation7 + $0x40] sm:$0xff]  ;;  %v500_v2 = vld [vmem:[#allocation7 + $0x50] sm:$0xff]  ;;  %v948_v3 = vpack.c.bf16 %v371_v59, %v369_v58 }
  0x96   : > { %933 = vmatpush1.bf16.msra.mxu0 %v932_v25  ;;  %985 = vmatpush1.bf16.msra.mxu1 %v984_v52  ;;  %v503_v4 = vld [vmem:[#allocation7 + $0x68] sm:$0xff]  ;;  %v505_v5 = vld [vmem:[#allocation7 + $0x78] sm:$0xff]  ;;  %v950_v6 = vpack.c.bf16 %v376_v62, %v374_v61  ;;  %v373_v7 = vld [vmem:[#allocation5 + $0x100] sm:$0xff]  ;;  %v992_v11 = vpack.c.bf16 %v500_v2, %v498_v1 }
  0x97   : > { %935 = vmatprep.subr.bf16.mxu0 %v934_v26  ;;  %987 = vmatprep.subr.bf16.mxu1 %v986_v53  ;;  %v375_v8 = vld [vmem:[#allocation5 + $0x110] sm:$0xff]  ;;  %v378_v9 = vld [vmem:[#allocation5 + $0x128] sm:$0xff]  ;;  %v380_v10 = vld [vmem:[#allocation5 + $0x138] sm:$0xff]  ;;  %v994_v12 = vpack.c.bf16 %v505_v5, %v503_v4 }
  0x98   : > { %v502_v13 = vld [vmem:[#allocation7 + $0x60] sm:$0xff]  ;;  %v504_v14 = vld [vmem:[#allocation7 + $0x70] sm:$0xff]  ;;  %v952_v15 = vpack.c.bf16 %v375_v8, %v373_v7  ;;  %v507_v16 = vld [vmem:[#allocation7 + $0x88] sm:$0xff]  ;;  %v954_v18 = vpack.c.bf16 %v380_v10, %v378_v9 }
  0x99   : > { %v509_v17 = vld [vmem:[#allocation7 + $0x98] sm:$0xff]  ;;  %v377_v19 = vld [vmem:[#allocation5 + $0x120] sm:$0xff]  ;;  %v379_v20 = vld [vmem:[#allocation5 + $0x130] sm:$0xff]  ;;  %v996_v23 = vpack.c.bf16 %v504_v14, %v502_v13 }
  0x9a   : > { %937 = vmatpush1.bf16.msra.mxu0 %v936_v31  ;;  %989 = vmatpush1.bf16.msra.mxu1 %v988_v63  ;;  %v382_v21 = vld [vmem:[#allocation5 + $0x148] sm:$0xff]  ;;  %v384_v22 = vld [vmem:[#allocation5 + $0x158] sm:$0xff]  ;;  %v998_v24 = vpack.c.bf16 %v509_v17, %v507_v16  ;;  %v506_v25 = vld [vmem:[#allocation7 + $0x80] sm:$0xff]  ;;  %v956_v27 = vpack.c.bf16 %v379_v20, %v377_v19 }
  0x9b   : > { %939 = vmatprep.subr.bf16.mxu0 %v938_v32  ;;  %991 = vmatprep.subr.bf16.mxu1 %v990_v0  ;;  %v508_v26 = vld [vmem:[#allocation7 + $0x90] sm:$0xff]  ;;  %v511_v28 = vld [vmem:[#allocation7 + $0xa8] sm:$0xff]  ;;  %v513_v29 = vld [vmem:[#allocation7 + $0xb8] sm:$0xff]  ;;  %v958_v30 = vpack.c.bf16 %v384_v22, %v382_v21 }
  0x9c   : > { %v381_v31 = vld [vmem:[#allocation5 + $0x140] sm:$0xff]  ;;  %v383_v32 = vld [vmem:[#allocation5 + $0x150] sm:$0xff]  ;;  %v386_v33 = vld [vmem:[#allocation5 + $0x168] sm:$0xff]  ;;  %v1000_v35 = vpack.c.bf16 %v508_v26, %v506_v25  ;;  %v1002_v36 = vpack.c.bf16 %v513_v29, %v511_v28 }
  0x9d   : > { %v388_v34 = vld [vmem:[#allocation5 + $0x178] sm:$0xff]  ;;  %v512_v38 = vld [vmem:[#allocation7 + $0xb0] sm:$0xff]  ;;  %v960_v39 = vpack.c.bf16 %v383_v32, %v381_v31  ;;  %v385_v43 = vld [vmem:[#allocation5 + $0x160] sm:$0xff] }
  0x9e   : > { %941 = vmatpush1.bf16.msra.mxu0 %v940_v37  ;;  %993 = vmatpush1.bf16.msra.mxu1 %v992_v11  ;;  %v510_v37 = vld [vmem:[#allocation7 + $0xa0] sm:$0xff]  ;;  %v517_v41 = vld [vmem:[#allocation7 + $0xd8] sm:$0xff]  ;;  %v962_v42 = vpack.c.bf16 %v388_v34, %v386_v33  ;;  %v387_v44 = vld [vmem:[#allocation5 + $0x170] sm:$0xff] }
  0x9f   : > { %943 = vmatprep.subr.bf16.mxu0 %v942_v40  ;;  %995 = vmatprep.subr.bf16.mxu1 %v994_v12  ;;  %v515_v40 = vld [vmem:[#allocation7 + $0xc8] sm:$0xff]  ;;  %v392_v46 = vld [vmem:[#allocation5 + $0x198] sm:$0xff]  ;;  %v1004_v47 = vpack.c.bf16 %v512_v38, %v510_v37  ;;  %v514_v49 = vld [vmem:[#allocation7 + $0xc0] sm:$0xff] }
  0xa0   : > { %v390_v45 = vld [vmem:[#allocation5 + $0x188] sm:$0xff]  ;;  %v1006_v48 = vpack.c.bf16 %v517_v41, %v515_v40  ;;  %v516_v50 = vld [vmem:[#allocation7 + $0xd0] sm:$0xff]  ;;  %v521_v53 = vld [vmem:[#allocation7 + $0xf8] sm:$0xff] }
  0xa1   : > { %v519_v52 = vld [vmem:[#allocation7 + $0xe8] sm:$0xff]  ;;  %v966_v54 = vpack.c.bf16 %v392_v46, %v390_v45  ;;  %v389_v55 = vld [vmem:[#allocation5 + $0x180] sm:$0xff]  ;;  %v391_v56 = vld [vmem:[#allocation5 + $0x190] sm:$0xff]  ;;  %v1008_v59 = vpack.c.bf16 %v516_v50, %v514_v49 }
  0xa2   : > { %945 = vmatpush1.bf16.msra.mxu0 %v944_v51  ;;  %997 = vmatpush1.bf16.msra.mxu1 %v996_v23  ;;  %v964_v51 = vpack.c.bf16 %v387_v44, %v385_v43  ;;  %v396_v58 = vld [vmem:[#allocation5 + $0x1b8] sm:$0xff]  ;;  %v1010_v60 = vpack.c.bf16 %v521_v53, %v519_v52  ;;  %v518_v61 = vld [vmem:[#allocation7 + $0xe0] sm:$0xff]  ;;  %v520_v62 = vld [vmem:[#allocation7 + $0xf0] sm:$0xff]  ;;  %v968_v63 = vpack.c.bf16 %v391_v56, %v389_v55 }
  0xa3   : > { %947 = vmatprep.subr.bf16.mxu0 %v946_v57  ;;  %999 = vmatprep.subr.bf16.mxu1 %v998_v24  ;;  %v394_v57 = vld [vmem:[#allocation5 + $0x1a8] sm:$0xff]  ;;  %v525_v1 = vld [vmem:[#allocation7 + $0x118] sm:$0xff]  ;;  %v395_v4 = vld [vmem:[#allocation5 + $0x1b0] sm:$0xff]  ;;  %v1012_v7 = vpack.c.bf16 %v520_v62, %v518_v61 }
  0xa4   : > { %v523_v0 = vld [vmem:[#allocation7 + $0x108] sm:$0xff]  ;;  %v970_v2 = vpack.c.bf16 %v396_v58, %v394_v57  ;;  %v522_v9 = vld [vmem:[#allocation7 + $0x100] sm:$0xff]  ;;  %v524_v10 = vld [vmem:[#allocation7 + $0x110] sm:$0xff] }
  0xa5   : > { %v398_v5 = vld [vmem:[#allocation5 + $0x1c8] sm:$0xff]  ;;  %v1014_v8 = vpack.c.bf16 %v525_v1, %v523_v0  ;;  %v529_v13 = vld [vmem:[#allocation7 + $0x138] sm:$0xff]  ;;  %v399_v16 = vld [vmem:[#allocation5 + $0x1d0] sm:$0xff]  ;;  %v1016_v19 = vpack.c.bf16 %v524_v10, %v522_v9 }
  0xa6   : > { %949 = vmatpush1.bf16.msra.mxu0 %v948_v3  ;;  %1001 = vmatpush1.bf16.msra.mxu1 %v1000_v35  ;;  %v393_v3 = vld [vmem:[#allocation5 + $0x1a0] sm:$0xff]  ;;  %v527_v12 = vld [vmem:[#allocation7 + $0x128] sm:$0xff]  ;;  %v528_v22 = vld [vmem:[#allocation7 + $0x130] sm:$0xff] }
  0xa7   : > { %951 = vmatprep.subr.bf16.mxu0 %v950_v6  ;;  %1003 = vmatprep.subr.bf16.mxu1 %v1002_v36  ;;  %v400_v6 = vld [vmem:[#allocation5 + $0x1d8] sm:$0xff]  ;;  %v972_v11 = vpack.c.bf16 %v395_v4, %v393_v3  ;;  %v402_v17 = vld [vmem:[#allocation5 + $0x1e8] sm:$0xff]  ;;  %v1018_v20 = vpack.c.bf16 %v529_v13, %v527_v12  ;;  %v526_v21 = vld [vmem:[#allocation7 + $0x120] sm:$0xff] }
  0xa8   : > { %v974_v14 = vpack.c.bf16 %v400_v6, %v398_v5  ;;  %v531_v24 = vld [vmem:[#allocation7 + $0x148] sm:$0xff]  ;;  %v533_v25 = vld [vmem:[#allocation7 + $0x158] sm:$0xff]  ;;  %v403_v28 = vld [vmem:[#allocation5 + $0x1f0] sm:$0xff]  ;;  %v1020_v29 = vpack.c.bf16 %v528_v22, %v526_v21 }
  0xa9   : > { %v530_v31 = vld [vmem:[#allocation7 + $0x140] sm:$0xff]  ;;  %v532_v32 = vld [vmem:[#allocation7 + $0x150] sm:$0xff]  ;;  %v535_v34 = vld [vmem:[#allocation7 + $0x168] sm:$0xff] }
  0xaa   : > { %953 = vmatpush1.bf16.msra.mxu0 %v952_v15  ;;  %1005 = vmatpush1.bf16.msra.mxu1 %v1004_v47  ;;  %v397_v15 = vld [vmem:[#allocation5 + $0x1c0] sm:$0xff]  ;;  %v537_v35 = vld [vmem:[#allocation7 + $0x178] sm:$0xff]  ;;  %v1024_v36 = vpack.c.bf16 %v532_v32, %v530_v31  ;;  %v539_v41 = vld [vmem:[#allocation7 + $0x188] sm:$0xff] }
  0xab   : > { %955 = vmatprep.subr.bf16.mxu0 %v954_v18  ;;  %1007 = vmatprep.subr.bf16.mxu1 %v1006_v48  ;;  %v404_v18 = vld [vmem:[#allocation5 + $0x1f8] sm:$0xff]  ;;  %v976_v23 = vpack.c.bf16 %v399_v16, %v397_v15  ;;  %v1026_v37 = vpack.c.bf16 %v537_v35, %v535_v34  ;;  %v534_v38 = vld [vmem:[#allocation7 + $0x160] sm:$0xff]  ;;  %v540_v46 = vld [vmem:[#allocation7 + $0x190] sm:$0xff] }
  0xac   : > { %v978_v26 = vpack.c.bf16 %v404_v18, %v402_v17  ;;  %v339_v40 = vld [vmem:[%s1592_s16] sm:$0xff]  ;;  %v543_v47 = vld [vmem:[#allocation7 + $0x1a8] sm:$0xff]  ;;  %v545_v48 = vld [vmem:[#allocation7 + $0x1b8] sm:$0xff]  ;;  %s750_s16 = scalar_lea.sflag [#allocation4], %s1588_s15 }
  0xad   : > { %v538_v45 = vld [vmem:[#allocation7 + $0x180] sm:$0xff]  ;;  %v1034_v50 = vpack.c.bf16 %v545_v48, %v543_v47  ;;  %v544_v52 = vld [vmem:[#allocation7 + $0x1b0] sm:$0xff]  ;;  %v547_v53 = vld [vmem:[#allocation7 + $0x1c8] sm:$0xff] }
  0xae   : > { %957 = vmatpush1.bf16.msra.mxu0 %v956_v27  ;;  %1009 = vmatpush1.bf16.msra.mxu1 %v1008_v59  ;;  %v401_v27 = vld [vmem:[#allocation5 + $0x1e0] sm:$0xff]  ;;  %v1032_v49 = vpack.c.bf16 %v540_v46, %v538_v45  ;;  %v548_v58 = vld [vmem:[#allocation7 + $0x1d0] sm:$0xff]  ;;  %v553_v61 = vld [vmem:[#allocation7 + $0x1f8] sm:$0xff] }
  0xaf   : > { %959 = vmatprep.subr.bf16.mxu0 %v958_v30  ;;  %1011 = vmatprep.subr.bf16.mxu1 %v1010_v60  ;;  %v1022_v30 = vpack.c.bf16 %v533_v25, %v531_v24  ;;  %v980_v33 = vpack.c.bf16 %v403_v28, %v401_v27  ;;  %v546_v57 = vld [vmem:[#allocation7 + $0x1c0] sm:$0xff]  ;;  %v551_v60 = vld [vmem:[#allocation7 + $0x1e8] sm:$0xff]  ;;  %v552_v0 = vld [vmem:[#allocation7 + $0x1f0] sm:$0xff] }
  0xb0   : > { %v1040_v59 = vpack.c.bf16 %v548_v58, %v546_v57  ;;  %v1042_v62 = vpack.c.bf16 %v553_v61, %v551_v60  ;;  %v656_v3 = vld [vmem:[#allocation8 + $0x88] sm:$0xff]  ;;  %v639_v4 = vld [vmem:[#allocation8] sm:$0xff]  ;;  %v642_v12 = vld [vmem:[#allocation8 + $0x18] sm:$0xff] }
  0xb1   : > { %v640_v6 = vld [vmem:[#allocation8 + $0x8] sm:$0xff]  ;;  %v659_v13 = vld [vmem:[#allocation8 + $0xa0] sm:$0xff]  ;;  %v646_v24 = vld [vmem:[#allocation8 + $0x38] sm:$0xff] }
  0xb2   : > { %961 = vmatpush1.bf16.msra.mxu0 %v960_v39  ;;  %1013 = vmatpush1.bf16.msra.mxu1 %v1012_v7  ;;  %v536_v39 = vld [vmem:[#allocation7 + $0x170] sm:$0xff]  ;;  %v1048_v9 = vpack.c.bf16 %v640_v6, %v639_v4  ;;  %v643_v17 = vld [vmem:[#allocation8 + $0x20] sm:$0xff]  ;;  %v644_v18 = vld [vmem:[#allocation8 + $0x28] sm:$0xff] }
  0xb3   : > { %963 = vmatprep.subr.bf16.mxu0 %v962_v42  ;;  %1015 = vmatprep.subr.bf16.mxu1 %v1014_v8  ;;  %v541_v42 = vld [vmem:[#allocation7 + $0x198] sm:$0xff]  ;;  %v1028_v43 = vpack.c.bf16 %v536_v39, %v534_v38  ;;  %v657_v7 = vld [vmem:[#allocation8 + $0x90] sm:$0xff]  ;;  %v1056_v21 = vpack.c.bf16 %v644_v18, %v643_v17  ;;  %v663_v25 = vld [vmem:[#allocation8 + $0xc0] sm:$0xff] }
  0xb4   : > { %v1030_v44 = vpack.c.bf16 %v541_v42, %v539_v41  ;;  %v658_v8 = vld [vmem:[#allocation8 + $0x98] sm:$0xff]  ;;  %v665_v31 = vld [vmem:[#allocation8 + $0xd0] sm:$0xff]  ;;  %v668_v38 = vld [vmem:[#allocation8 + $0xe8] sm:$0xff]  ;;  %v407_v41 = vlaneseq }
  0xb5   : > { %v1050_v10 = vpack.c.bf16 %v658_v8, %v657_v7  ;;  %v666_v32 = vld [vmem:[#allocation8 + $0xd8] sm:$0xff]  ;;  %v649_v35 = vld [vmem:[#allocation8 + $0x50] sm:$0xff] }
  0xb6   : > { %965 = vmatpush1.bf16.msra.mxu0 %v964_v51  ;;  %1017 = vmatpush1.bf16.msra.mxu1 %v1016_v19  ;;  %v542_v51 = vld [vmem:[#allocation7 + $0x1a0] sm:$0xff]  ;;  %v661_v19 = vld [vmem:[#allocation8 + $0xb0] sm:$0xff]  ;;  %v1066_v34 = vpack.c.bf16 %v666_v32, %v665_v31  ;;  %v408_v42 = vshrl.u32 %v407_v41, 7  ;;  %v670_v58 = vld [vmem:[#allocation8 + $0xf8] sm:$0xff] }
  0xb7   : > { %967 = vmatprep.subr.bf16.mxu0 %v966_v54  ;;  %1019 = vmatprep.subr.bf16.mxu1 %v1018_v20  ;;  %v549_v54 = vld [vmem:[#allocation7 + $0x1d8] sm:$0xff]  ;;  %v1036_v55 = vpack.c.bf16 %v544_v52, %v542_v51  ;;  %v669_v57 = vld [vmem:[#allocation8 + $0xf0] sm:$0xff] }
  0xb8   : > { %v1038_v56 = vpack.c.bf16 %v549_v54, %v547_v53  ;;  %v662_v20 = vld [vmem:[#allocation8 + $0xb8] sm:$0xff]  ;;  %v413_v45 = vsub.s32 1, %v408_v42  ;;  %v651_v54 = vld [vmem:[#allocation8 + $0x60] sm:$0xff]  ;;  %v653_v60 = vld [vmem:[#allocation8 + $0x70] sm:$0xff] }
  0xb9   : > { %v1058_v22 = vpack.c.bf16 %v662_v20, %v661_v19  ;;  %v654_v61 = vld [vmem:[#allocation8 + $0x78] sm:$0xff] }
  0xba   : > { %969 = vmatpush1.bf16.msra.mxu0 %v968_v63  ;;  %1021 = vmatpush1.bf16.msra.mxu1 %v1020_v29  ;;  %v550_v63 = vld [vmem:[#allocation7 + $0x1e0] sm:$0xff] }
  0xbb   : > { %971 = vmatprep.subr.bf16.mxu0 %v970_v2  ;;  %1023 = vmatprep.subr.bf16.mxu1 %v1022_v30  ;;  %v1044_v1 = vpack.c.bf16 %v552_v0, %v550_v63  ;;  %v655_v2 = vld [vmem:[#allocation8 + $0x80] sm:$0xff]  ;;  %v648_v30 = vld [vmem:[#allocation8 + $0x48] sm:$0xff] }
  0xbc   : > { %v1046_v5 = vpack.c.bf16 %v656_v3, %v655_v2  ;;  %v647_v29 = vld [vmem:[#allocation8 + $0x40] sm:$0xff] }
  0xbd   : > { %v554_v63 = vld [vmem:[%s1670_s4] sm:$0x3] }
  0xbe   : > { %973 = vmatpush1.bf16.msra.mxu0 %v972_v11  ;;  %1025 = vmatpush1.bf16.msra.mxu1 %v1024_v36  ;;  %v641_v11 = vld [vmem:[#allocation8 + $0x10] sm:$0xff]  ;;  %v650_v36 = vld [vmem:[#allocation8 + $0x58] sm:$0xff] }
  0xbf   : > { %975 = vmatprep.subr.bf16.mxu0 %v974_v14  ;;  %1027 = vmatprep.subr.bf16.mxu1 %v1026_v37  ;;  %v660_v14 = vld [vmem:[#allocation8 + $0xa8] sm:$0xff]  ;;  %v1052_v15 = vpack.c.bf16 %v642_v12, %v641_v11  ;;  %v667_v37 = vld [vmem:[#allocation8 + $0xe0] sm:$0xff]  ;;  %v1068_v39 = vpack.c.bf16 %v650_v36, %v649_v35 }
  0xc0   : > { %v1054_v16 = vpack.c.bf16 %v660_v14, %v659_v13 }
  0xc2   : > { %977 = vmatpush1.bf16.msra.mxu0 %v976_v23  ;;  %1029 = vmatpush1.bf16.msra.mxu1 %v1028_v43  ;;  %v645_v23 = vld [vmem:[#allocation8 + $0x30] sm:$0xff]  ;;  %v409_v43 = vsub.s32 0, %v408_v42 }
  0xc3   : > { %979 = vmatprep.subr.bf16.mxu0 %v978_v26  ;;  %1031 = vmatprep.subr.bf16.mxu1 %v1030_v44  ;;  %v664_v26 = vld [vmem:[#allocation8 + $0xc8] sm:$0xff]  ;;  %v1060_v27 = vpack.c.bf16 %v646_v24, %v645_v23  ;;  %v405_v44 = vld [vmem:[%s1668_s2] sm:$0x3] }
  0xc4   : > { %v1062_v28 = vpack.c.bf16 %v664_v26, %v663_v25  ;;  %v410_v46 = vrot.slane %v405_v44, %v409_v43  ;;  %v414_v47 = vrot.slane %v405_v44, %v413_v45  ;;  %v559_v0 = vrot.slane %v554_v63, %v409_v43 }
  0xc6   : > { %981 = vmatpush1.bf16.msra.mxu0 %v980_v33  ;;  %1033 = vmatpush1.bf16.msra.mxu1 %v1032_v49  ;;  %v1064_v33 = vpack.c.bf16 %v648_v30, %v647_v29 }
  0xc7   : > { %1035 = vmatprep.subr.bf16.mxu1 %v1034_v50  ;;  %1047 = vmatprep.subr.bf16.mxu0 %v1046_v5 }
  0xc9   : > { %482 = vmatmul.mubr.f32.vlgmr.msra.gmra.mrb[0].mxu0 %v339_v40  ;;  %v1070_v40 = vpack.c.bf16 %v668_v38, %v667_v37 }
  0xca   : > { %1037 = vmatpush1.bf16.msra.mxu1 %v1036_v55  ;;  %1049 = vmatpush3.bf16.msra.mxu0 %v1048_v9  ;;  %v652_v55 = vld [vmem:[#allocation8 + $0x68] sm:$0xff]  ;;  %v877_v9 = vld [vmem:[%s1672_s6] ss:$0 sm:$0xff] }
  0xcb   : > { %1039 = vmatprep.subr.bf16.mxu1 %v1038_v56  ;;  %1051 = vmatprep.subr.bf16.mxu0 %v1050_v10  ;;  %v1072_v56 = vpack.c.bf16 %v652_v55, %v651_v54 }
  0xce   : > { %1041 = vmatpush1.bf16.msra.mxu1 %v1040_v59  ;;  %1053 = vmatpush3.bf16.msra.mxu0 %v1052_v15  ;;  %v1074_v59 = vpack.c.bf16 %v670_v58, %v669_v57 }
  0xcf   : > { %1043 = vmatprep.subr.bf16.mxu1 %v1042_v62  ;;  %1055 = vmatprep.subr.bf16.mxu0 %v1054_v16  ;;  %v1076_v62 = vpack.c.bf16 %v654_v61, %v653_v60 }
  0xd2   : > { %1045 = vmatpush1.bf16.msra.mxu1 %v1044_v1  ;;  %1057 = vmatpush3.bf16.msra.mxu0 %v1056_v21  ;;  %v563_v1 = vrot.slane %v554_v63, %v413_v45 }
  0xd3   : > { %1059 = vmatprep.subr.bf16.mxu0 %v1058_v22 }
  0xd6   : > { %1061 = vmatpush3.bf16.msra.mxu0 %v1060_v27 }
  0xd7   : > { %1063 = vmatprep.subr.bf16.mxu0 %v1062_v28 }
  0xda   : > { %1065 = vmatpush3.bf16.msra.mxu0 %v1064_v33 }
  0xdb   : > { %1067 = vmatprep.subr.bf16.mxu0 %v1066_v34 }
  0xde   : > { %1069 = vmatpush3.bf16.msra.mxu0 %v1068_v39 }
  0xdf   : > { %1071 = vmatprep.subr.bf16.mxu0 %v1070_v40 }
  0xe2   : > { %1073 = vmatpush3.bf16.msra.mxu0 %v1072_v56 }
  0xe3   : > { %1075 = vmatprep.subr.bf16.mxu0 %v1074_v59 }
  0xe6   : > { %1077 = vmatpush3.bf16.msra.mxu0 %v1076_v62 }
 0x19c   : > { %v483_v48 = vpop.f32.mrb[0].mxu0 }
 0x19d   : > { %v484_v49 = vadd.f32 %v483_v48, %v410_v46  ;;  %v485_v50 = vpop.f32.mrb[1].mxu0 }
 0x19e   : > { %v486_v51 = vadd.f32 %v485_v50, %v414_v47 }
 0x19f   : > { %v488_v53 = vmax.f32 %v484_v49, 0.0 }
 0x1a0   : > { %v489_v52 = vmax.f32 %v486_v51, 0.0 }
 0x1a2   : > { %630 = vmatprep.mubr.f32.mxu1 %v489_v52 }
 0x1a3   : > { %631 = vmatmul.mubr.f32.vlgmr.msra.gmra.mrb[0].mxu1 %v488_v53 }
 0x276   : > { %v632_v2 = vpop.f32.mrb[0].mxu1 }
 0x277   : > { %v633_v3 = vadd.f32 %v632_v2, %v559_v0  ;;  %v634_v4 = vpop.f32.mrb[1].mxu1 }
 0x278   : > { %v635_v5 = vadd.f32 %v634_v4, %v563_v1 }
 0x279   : > { %v637_v7 = vmax.f32 %v633_v3, 0.0 }
 0x27a   : > { %v638_v6 = vmax.f32 %v635_v5, 0.0 }
 0x27c   : > { %742 = vmatprep.mubr.f32.mxu0 %v638_v6 }
 0x27d   : > { %743 = vmatmul.mubr.f32.vlgmr.msra.gmra.mrb[2].mxu0 %v637_v7 }
 0x350   : > { %v915_v8 = vpop.f32.mrb[2].mxu0 }
 0x351   : > { %v916_v10 = vpop.f32.mrb[3].mxu0 }
 0x352   : > { %v917_v11 = vadd.f32 %v916_v10, %v915_v8 }
 0x354   : > { %v745_v12 = vadd.f32 %v917_v11, %v877_v9 }
 0x356   : > { %748 = vst [vmem:[%s338_s29] sm:$0xff] %v745_v12 }
 0x357   : > { %1286 = shalt.err (!%p1283_p4)
}
 0x358   : > { %s1287_s15 = scalar_lea.hbm %s1622_s21, 128  ;;  %s1291_s13 = scalar_lea.hbm %s1673_s7, 256 }
 0x359   : > { %p1288_p0 = scmp.ne.s32.totalorder %s1622_s21, %s1287_s15  ;;  %p1292_p8 = scmp.lt.u32.totalorder %s1622_s21, %s1673_s7 }
 0x35a   : > { %p1293_p13 = scmp.lt.u32.totalorder %s1291_s13, %s1287_s15  ;;  %p1295_p10 = scmp.lt.u32.totalorder %s1287_s15, %s1622_s21 }
 0x35b   : > { %p1289_p9 = pnand %p1288_p0, %p1543_p5 }
 0x35c   : > { %p1294_p6 = por %p1293_p13, %p1292_p8 }
 0x35d   : > { %p1290_p11 = pneg %p1289_p9 }
 0x35e   : > { %p1296_p3 = por %p1295_p10, %p1294_p6 }
 0x360   : > { %p1297_p7 = pnand %p1296_p3, %p1290_p11 }
 0x362   : > { %1300 = shalt.err (!%p1297_p7)
}
 0x363   : > { %1092 = dma.vmem_to_hbm [thread:$0]  (%p1543_p5), %s1624_s11, 128, %s1622_s21, %s750_s16  }
 0x364 PF: > { %s1693_s29 = sld [smem:[#allocation15_spill]]  ;;  %s775_s17 = sand.u32 1, %s1335_s24  }
 0x365   : > { %p1695_p2 = scmp.ge.s32.totalorder %s1347_s27, 2  ;;  %s776_s18 = scalar_lea.sflag [#allocation4], %s775_s17 }
 0x36a   : > { %p1694_p12 = scmp.ne.s32.totalorder %s1693_s29, 0 }
 0x36c   : > { %p1109_p1 = pnand %p1695_p2, %p1694_p12 }
 0x36e   : > { %1330 = dma.done.wait (!%p1109_p1), %s776_s18, 128  }
 0x36f   : > { %1332 = vsyncadd (!%p1109_p1), %s776_s18, 4294967168  ;;  %p22_p4 = scmp.ge.s32.totalorder %s1529_s8, 4   ;;  %s1696_s24 = smov %s1339_s25 }
 0x370   : > { %s1697_s25 = smov %s1343_s26  ;;  %s1698_s26 = smov %s1539_s19 }
 0x371   : > { %s1699_s27 = smov %s1529_s8  ;;  %24 = sbr.rel (!%p22_p4) target bundleno = 7 (0x7), region = 105 }
 0x378   :  { %781 = vsyncpa [#allocation3], 1 }
 0x379   :  { %783 = vsyncpa [#allocation3 + $0x1], 1 }
 0x37a   :  { %784 = vsyncpa [#allocation6], 1 }
 0x37b   :  { %785 = vsyncpa [#allocation9], 1 }
 0x37c   :  { %786 = vsyncpa [#allocation4], 1 }
 0x37d   :  { %788 = vsyncpa [#allocation4 + $0x1], 1 }

</bundles_post_ra>
